<compile_context>
chip_gen: v5e
topology: v5e:2x2
jax: 0.10.0
libtpu: 0.0.40
codegen_flags: <defaults>
</compile_context>

<pallas_src>
import jax
import jax.numpy as jnp
from jax.experimental import pallas as pl
from jax.experimental.pallas import tpu as pltpu

LANE = 128


def _round_up(x, m):
    return (x + m - 1) // m * m


def _fc1_relu(xT, w1, b1):
    # xT: (in_dim, tb), w1: (H_pad, in_dim), b1: (H_pad, 1) -> (H_pad, tb)
    if xT.shape[0] == 1:
        # K == 1: outer product on the VPU (broadcast multiply), skip the MXU.
        h = w1 * xT
    else:
        # TODO(synk): for very large in_dim (v7x 64 MiB VMEM) tile K with an
        # "arbitrary" accumulator grid axis instead of one full-width w1 block.
        h = jnp.dot(w1, xT, preferred_element_type=jnp.float32)
    return jnp.maximum(h + b1, 0.0)  # bias lane-broadcast + ReLU, all f32 (v5e-safe)


def _mlp_score_kernel(xT_ref, w1_ref, b1_ref, w2_ref, b2_ref, o_ref):
    h = _fc1_relu(xT_ref[...], w1_ref[...], b1_ref[...])        # (H_pad, tb)
    # fc2: VPU multiply by the w2 column, reduce over hidden (sublane axis).
    score = jnp.sum(h * w2_ref[...], axis=0, keepdims=True)     # (1, tb) lane-dense
    o_ref[...] = (score + b2_ref[0]).astype(o_ref.dtype)        # b2 scalar from SMEM


def _mlp_hidden_kernel(xT_ref, w1_ref, b1_ref, o_ref):
    o_ref[...] = _fc1_relu(xT_ref[...], w1_ref[...], b1_ref[...]).astype(o_ref.dtype)


def mlp_forward(x, params, *, to_score=True, tile_b=512):
    """x: (B, in_dim). params in PyTorch nn.Linear layout:
       w1 (hidden, in_dim), b1 (hidden,), [w2 (1, hidden), b2 (1,)].
       Returns (B, 1) if to_score else (B, hidden)."""
    B, in_dim = x.shape
    hidden = params["w1"].shape[0]
    H_pad = _round_up(hidden, LANE)
    f32 = jnp.float32

    # Zero-pad the hidden axis to a full vreg width.
    w1p = jnp.zeros((H_pad, in_dim), f32).at[:hidden, :].set(params["w1"].astype(f32))
    b1p = jnp.zeros((H_pad, 1), f32).at[:hidden, 0].set(params["b1"].astype(f32))

    # Batch on the lane axis; pad batch only when it must be tiled.
    if B <= tile_b:
        tb, B_pad = B, B
        xT = x.astype(f32).T
    else:
        tb = _round_up(min(tile_b, B), LANE)
        B_pad = _round_up(B, tb)
        xT = jnp.zeros((in_dim, B_pad), f32).at[:, :B].set(x.astype(f32).T)
    grid = (B_pad // tb,)

    xT_spec = pl.BlockSpec((in_dim, tb), lambda i: (0, i))
    w1_spec = pl.BlockSpec((H_pad, in_dim), lambda i: (0, 0))
    b1_spec = pl.BlockSpec((H_pad, 1), lambda i: (0, 0))
    cparams = pltpu.CompilerParams(dimension_semantics=("parallel",))

    if to_score:
        w2p = jnp.zeros((H_pad, 1), f32).at[:hidden, 0].set(params["w2"][0].astype(f32))
        b2s = params["b2"].reshape((1,)).astype(f32)
        out = pl.pallas_call(
            _mlp_score_kernel,
            out_shape=jax.ShapeDtypeStruct((1, B_pad), jnp.float32),
            grid_spec=pltpu.PrefetchScalarGridSpec(
                num_scalar_prefetch=0,
                grid=grid,
                in_specs=[xT_spec, w1_spec, b1_spec,
                          pl.BlockSpec((H_pad, 1), lambda i: (0, 0)),
                          pl.BlockSpec(memory_space=pltpu.MemorySpace.SMEM)],
                out_specs=pl.BlockSpec((1, tb), lambda i: (0, i)),
            ),
            compiler_params=cparams,
        )(xT, w1p, b1p, w2p, b2s)
        return out[:, :B].T.astype(x.dtype)               # (B, 1)
    else:
        out = pl.pallas_call(
            _mlp_hidden_kernel,
            out_shape=jax.ShapeDtypeStruct((H_pad, B_pad), jnp.float32),
            grid_spec=pltpu.PrefetchScalarGridSpec(
                num_scalar_prefetch=0,
                grid=grid,
                in_specs=[xT_spec, w1_spec, b1_spec],
                out_specs=pl.BlockSpec((H_pad, tb), lambda i: (0, i)),
            ),
            compiler_params=cparams,
        )(xT, w1p, b1p)
        return out[:hidden, :B].T.astype(x.dtype)         # (B, hidden)


def init_params(key, in_dim=1, hidden_dim=80, to_score=True):
    """Deterministic synthetic init, PyTorch nn.Linear native shapes."""
    k1, k2, k3, k4 = jax.random.split(key, 4)
    params = {
        "w1": jax.random.normal(k1, (hidden_dim, in_dim), jnp.float32) * 0.1,   # fc1.weight
        "b1": jax.random.normal(k2, (hidden_dim,), jnp.float32) * 0.1,          # fc1.bias
    }
    if to_score:
        params["w2"] = jax.random.normal(k3, (1, hidden_dim), jnp.float32) * 0.1  # fc2.weight
        params["b2"] = jax.random.normal(k4, (1,), jnp.float32) * 0.1             # fc2.bias
    return params


def _ref_forward(x, params, to_score=True):
    h = jnp.maximum(x @ params["w1"].T + params["b1"], 0.0)
    if to_score:
        return h @ params["w2"].T + params["b2"]
    return h


if __name__ == "__main__":
    key = jax.random.PRNGKey(0)
    kx, kp = jax.random.split(key)

    B, in_dim, hidden = 16, 1, 80
    x = jax.random.normal(kx, (B, in_dim), jnp.float32)
    params = init_params(kp, in_dim=in_dim, hidden_dim=hidden, to_score=True)

    # Score path (fc1 -> ReLU -> fc2): single grid step, lane-dense output.
    out = jax.block_until_ready(mlp_forward(x, params, to_score=True))
    ref = _ref_forward(x, params, to_score=True)
    assert out.shape == (B, 1)
    assert jnp.allclose(out, ref, atol=1e-5, rtol=1e-5)

    # Hidden path (to_score=False).
    out_h = jax.block_until_ready(mlp_forward(x, params, to_score=False))
    ref_h = _ref_forward(x, params, to_score=False)
    assert out_h.shape == (B, hidden)
    assert jnp.allclose(out_h, ref_h, atol=1e-5, rtol=1e-5)

    # Tiled path: batch bigger than one tile and not a multiple of it.
    B2 = 260
    x2 = jax.random.normal(kx, (B2, in_dim), jnp.float32)
    out2 = jax.block_until_ready(mlp_forward(x2, params, to_score=True, tile_b=128))
    ref2 = _ref_forward(x2, params, to_score=True)
    assert out2.shape == (B2, 1)
    assert jnp.allclose(out2, ref2, atol=1e-5, rtol=1e-5)

    print("KERNEL_OK")
</pallas_src>

<mosaic_0001>
module attributes {stable_mosaic.version = 11 : i64} {
  func.func @_mlp_score_kernel(%arg0: i32, %arg1: memref<1x16xf32, #tpu.memory_space<vmem>>, %arg2: memref<128x1xf32, #tpu.memory_space<vmem>>, %arg3: memref<128x1xf32, #tpu.memory_space<vmem>>, %arg4: memref<128x1xf32, #tpu.memory_space<vmem>>, %arg5: memref<1xf32, #tpu.memory_space<smem>>, %arg6: memref<1x16xf32, #tpu.memory_space<vmem>>) attributes {dimension_semantics = [#tpu.dimension_semantics<parallel>], iteration_bounds = array<i64: 1>, scalar_prefetch = 0 : i64, scratch_operands = 0 : i64, tpu.core_type = #tpu.core_type<tc>, window_params = [{transform_indices = @transform_0, window_bounds = array<i64: 1, 16>}, {pipeline_mode = #tpu.pipeline_mode<synchronous>, transform_indices = @transform_1, window_bounds = array<i64: 128, 1>}, {pipeline_mode = #tpu.pipeline_mode<synchronous>, transform_indices = @transform_2, window_bounds = array<i64: 128, 1>}, {pipeline_mode = #tpu.pipeline_mode<synchronous>, transform_indices = @transform_3, window_bounds = array<i64: 128, 1>}, {transform_indices = @transform_4, window_bounds = array<i64: 1>}, {transform_indices = @transform_5, window_bounds = array<i64: 1, 16>}]} {
    %c0 = arith.constant 0 : index
    %c0_0 = arith.constant 0 : index
    %0 = vector.load %arg1[%c0, %c0_0] : memref<1x16xf32, #tpu.memory_space<vmem>>, vector<1x16xf32>
    %c0_1 = arith.constant 0 : index
    %c0_2 = arith.constant 0 : index
    %1 = vector.load %arg2[%c0_1, %c0_2] : memref<128x1xf32, #tpu.memory_space<vmem>>, vector<128x1xf32>
    %c0_3 = arith.constant 0 : index
    %c0_4 = arith.constant 0 : index
    %2 = vector.load %arg3[%c0_3, %c0_4] : memref<128x1xf32, #tpu.memory_space<vmem>>, vector<128x1xf32>
    %3 = vector.broadcast %1 : vector<128x1xf32> to vector<128x16xf32>
    %4 = vector.broadcast %0 : vector<1x16xf32> to vector<128x16xf32>
    %5 = arith.mulf %3, %4 : vector<128x16xf32>
    %6 = vector.broadcast %2 : vector<128x1xf32> to vector<128x16xf32>
    %7 = arith.addf %5, %6 : vector<128x16xf32>
    %cst = arith.constant 0.000000e+00 : f32
    %8 = vector.broadcast %cst : f32 to vector<128x16xf32>
    %9 = arith.maximumf %7, %8 : vector<128x16xf32>
    %c0_5 = arith.constant 0 : index
    %c0_6 = arith.constant 0 : index
    %10 = vector.load %arg4[%c0_5, %c0_6] : memref<128x1xf32, #tpu.memory_space<vmem>>, vector<128x1xf32>
    %11 = vector.broadcast %10 : vector<128x1xf32> to vector<128x16xf32>
    %12 = arith.mulf %9, %11 : vector<128x16xf32>
    %cst_7 = arith.constant dense<0.000000e+00> : vector<16xf32>
    %13 = vector.multi_reduction <add>, %12, %cst_7 [0] : vector<128x16xf32> to vector<16xf32>
    %14 = vector.shape_cast %13 : vector<16xf32> to vector<1x16xf32>
    %c0_8 = arith.constant 0 : index
    %15 = memref.load %arg5[%c0_8] : memref<1xf32, #tpu.memory_space<smem>>
    %16 = vector.broadcast %15 : f32 to vector<1x16xf32>
    %17 = arith.addf %14, %16 : vector<1x16xf32>
    %c0_9 = arith.constant 0 : index
    %c0_10 = arith.constant 0 : index
    %18 = vector.load %arg6[%c0_9, %c0_10] : memref<1x16xf32, #tpu.memory_space<vmem>>, vector<1x16xf32>
    tpu.vector_store %arg6[%c0_9, %c0_10], %17 {strides = array<i32>} : memref<1x16xf32, #tpu.memory_space<vmem>>, vector<1x16xf32>,
    return
  }
  func.func @transform_0(%arg0: i32) -> (i32, i32) {
    %c0_i32 = arith.constant 0 : i32
    %c0_i32_0 = arith.constant 0 : i32
    return %c0_i32, %arg0 : i32, i32
  }
  func.func @transform_1(%arg0: i32) -> (i32, i32) {
    %c0_i32 = arith.constant 0 : i32
    %c0_i32_0 = arith.constant 0 : i32
    %c0_i32_1 = arith.constant 0 : i32
    return %c0_i32, %c0_i32_0 : i32, i32
  }
  func.func @transform_2(%arg0: i32) -> (i32, i32) {
    %c0_i32 = arith.constant 0 : i32
    %c0_i32_0 = arith.constant 0 : i32
    %c0_i32_1 = arith.constant 0 : i32
    return %c0_i32, %c0_i32_0 : i32, i32
  }
  func.func @transform_3(%arg0: i32) -> (i32, i32) {
    %c0_i32 = arith.constant 0 : i32
    %c0_i32_0 = arith.constant 0 : i32
    %c0_i32_1 = arith.constant 0 : i32
    return %c0_i32, %c0_i32_0 : i32, i32
  }
  func.func @transform_4(%arg0: i32) -> i32 {
    %c0_i32 = arith.constant 0 : i32
    %c0_i32_0 = arith.constant 0 : i32
    return %c0_i32 : i32
  }
  func.func @transform_5(%arg0: i32) -> (i32, i32) {
    %c0_i32 = arith.constant 0 : i32
    %c0_i32_0 = arith.constant 0 : i32
    return %c0_i32, %arg0 : i32, i32
  }
}

</mosaic_0001>

<bundles_post_ra>
// kernel: tpu_custom_call.1
= control target key start
LH: loop header
LB: loop body
LE: loop exit
PB: predicated region body
PF: predicated region fallthrough
CT: control target
= control target key end

     0   :  { %v469_v3 = vmov 0   ;;  %s739_s0 = inlined_call_operand.vmem [shape: f32[1,16], index: 0, kind: input, shape index: {}]   ;;  %s740_s1 = inlined_call_operand.vmem [shape: f32[128,1], index: 1, kind: input, shape index: {}]   ;;  %s741_s2 = inlined_call_operand.vmem [shape: f32[128,1], index: 2, kind: input, shape index: {}]   ;;  %s742_s3 = inlined_call_operand.vmem [shape: f32[128,1], index: 3, kind: input, shape index: {}]   ;;  %s743_s4 = inlined_call_operand.<no memory space> [shape: f32[1], index: 4, kind: input, shape index: {}]   ;;  %s744_s5 = inlined_call_operand.hbm [shape: f32[1,16], index: 5, kind: output, shape index: {}]  }
   0x1   :  { %v27_v0 = vld [vmem:[%s740_s1 + $0x20] sm:$0xff]  ;;  %v25_v1 = vld [vmem:[%s740_s1 + $0x10] sm:$0xff]  ;;  %441 = vset.pattern.permute.xlu2 %v469_v3  ;;  %440 = vset.pattern.permute.xlu1 %v469_v3 }
   0x2   :  { %v23_v2 = vld [vmem:[%s740_s1] sm:$0xff]  ;;  %439 = vset.pattern.permute.xlu0 %v469_v3  ;;  %77 = vperm.xlu2 %441, %v27_v0  }
   0x3   :  { %67 = vperm.xlu1 %440, %v25_v1   ;;  %57 = vperm.xlu0 %439, %v23_v2  }
   0x4   :  { %11 = vsyncpa [#allocation4], 0  ;;  %v28_v4 = vld [vmem:[%s740_s1 + $0x28] sm:$0xff]  ;;  %v26_v5 = vld [vmem:[%s740_s1 + $0x18] sm:$0xff]  ;;  %vm378_vm0 = vcmask 130048   ;;  %s470_s12 = smov [#allocation3]  }
   0x5   :  { %v24_v6 = vld [vmem:[%s740_s1 + $0x8] sm:$0xff]  ;;  %v31_v7 = vld [vmem:[%s740_s1 + $0x40] sm:$0xff]  ;;  %v30_v8 = vld [vmem:[%s740_s1 + $0x38] sm:$0xff]  ;;  %s428_s15 = sshll.u32 %s744_s5, 4  ;;  %vm419_vm1 = vcmask 122880   ;;  %s429_s15 = int_to_ptr.hbm [resolvable:$true] %s428_s15 }
   0x6   :  { %v29_v9 = vld [vmem:[%s740_s1 + $0x30] sm:$0xff]  ;;  %v34_v10 = vld [vmem:[%s740_s1 + $0x58] sm:$0xff]  ;;  %v32_v12 = vld [vmem:[%s740_s1 + $0x48] sm:$0xff] }
   0x7   :  { %v33_v11 = vld [vmem:[%s740_s1 + $0x50] sm:$0xff]  ;;  %v36_v14 = vld [vmem:[%s740_s1 + $0x68] sm:$0xff]  ;;  %v35_v15 = vld [vmem:[%s740_s1 + $0x60] sm:$0xff] }
   0x8   :  { %v37_v13 = vld [vmem:[%s740_s1 + $0x70] sm:$0xff]  ;;  %v40_v16 = vld [vmem:[%s741_s2 + $0x8] sm:$0xff]  ;;  %v39_v17 = vld [vmem:[%s741_s2] sm:$0xff] }
   0x9   :  { %v38_v18 = vld [vmem:[%s740_s1 + $0x78] sm:$0xff]  ;;  %v43_v19 = vld [vmem:[%s741_s2 + $0x20] sm:$0xff]  ;;  %v41_v21 = vld [vmem:[%s741_s2 + $0x10] sm:$0xff] }
   0xa   :  { %82 = vperm.xlu2 %441, %v28_v4   ;;  %v42_v20 = vld [vmem:[%s741_s2 + $0x18] sm:$0xff]  ;;  %v45_v23 = vld [vmem:[%s741_s2 + $0x30] sm:$0xff]  ;;  %v44_v24 = vld [vmem:[%s741_s2 + $0x28] sm:$0xff] }
   0xb   :  { %72 = vperm.xlu1 %440, %v26_v5   ;;  %62 = vperm.xlu0 %439, %v24_v6   ;;  %v46_v22 = vld [vmem:[%s741_s2 + $0x38] sm:$0xff]  ;;  %v49_v25 = vld [vmem:[%s741_s2 + $0x50] sm:$0xff]  ;;  %v48_v26 = vld [vmem:[%s741_s2 + $0x48] sm:$0xff] }
   0xc   :  { %v47_v27 = vld [vmem:[%s741_s2 + $0x40] sm:$0xff]  ;;  %v52_v28 = vld [vmem:[%s741_s2 + $0x68] sm:$0xff]  ;;  %v50_v30 = vld [vmem:[%s741_s2 + $0x58] sm:$0xff] }
   0xd   :  { %v51_v29 = vld [vmem:[%s741_s2 + $0x60] sm:$0xff]  ;;  %v54_v32 = vld [vmem:[%s741_s2 + $0x78] sm:$0xff]  ;;  %v53_v33 = vld [vmem:[%s741_s2 + $0x70] sm:$0xff]  ;;  %s426_s2 = sshll.u32 %s470_s12, 4  ;;  %s427_s2 = int_to_ptr.vmem [resolvable:$true] %s426_s2 }
   0xe   :  { %v266_v31 = vld [vmem:[%s742_s3] sm:$0xff]  ;;  %v269_v34 = vld [vmem:[%s742_s3 + $0x18] sm:$0xff]  ;;  %v268_v35 = vld [vmem:[%s742_s3 + $0x10] sm:$0xff] }
   0xf   :  { %v267_v36 = vld [vmem:[%s742_s3 + $0x8] sm:$0xff]  ;;  %v272_v38 = vld [vmem:[%s742_s3 + $0x30] sm:$0xff]  ;;  %v270_v40 = vld [vmem:[%s742_s3 + $0x20] sm:$0xff] }
  0x10   :  { %v271_v39 = vld [vmem:[%s742_s3 + $0x28] sm:$0xff]  ;;  %v274_v43 = vld [vmem:[%s742_s3 + $0x40] sm:$0xff]  ;;  %v273_v44 = vld [vmem:[%s742_s3 + $0x38] sm:$0xff] }
  0x11   :  { %v275_v42 = vld [vmem:[%s742_s3 + $0x48] sm:$0xff]  ;;  %v278_v46 = vld [vmem:[%s742_s3 + $0x60] sm:$0xff]  ;;  %v277_v47 = vld [vmem:[%s742_s3 + $0x58] sm:$0xff] }
  0x12   :  { %97 = vperm.xlu2 %441, %v31_v7   ;;  %v276_v48 = vld [vmem:[%s742_s3 + $0x50] sm:$0xff]  ;;  %v281_v52 = vld [vmem:[%s742_s3 + $0x78] sm:$0xff]  ;;  %v279_v54 = vld [vmem:[%s742_s3 + $0x68] sm:$0xff] }
  0x13   :  { %92 = vperm.xlu1 %440, %v30_v8   ;;  %87 = vperm.xlu0 %439, %v29_v9   ;;  %v280_v53 = vld [vmem:[%s742_s3 + $0x70] sm:$0xff] }
  0x1a   :  { %112 = vperm.xlu2 %441, %v34_v10  }
  0x1b   :  { %107 = vperm.xlu1 %440, %v33_v11   ;;  %102 = vperm.xlu0 %439, %v32_v12  }
  0x22   :  { %127 = vperm.xlu2 %441, %v37_v13  }
  0x23   :  { %122 = vperm.xlu1 %440, %v36_v14   ;;  %117 = vperm.xlu0 %439, %v35_v15  }
  0x2a   :  { %161 = vperm.xlu2 %441, %v40_v16   ;;  %v678_v16 = vld [vmem:[%s739_s0] ss:$0 sm:$0xff] }
  0x2b   :  { %156 = vperm.xlu1 %440, %v39_v17   ;;  %132 = vperm.xlu0 %439, %v38_v18  }
  0x32   :  { %176 = vperm.xlu2 %441, %v43_v19  }
  0x33   :  { %171 = vperm.xlu1 %440, %v42_v20   ;;  %166 = vperm.xlu0 %439, %v41_v21  }
  0x3a   :  { %191 = vperm.xlu2 %441, %v46_v22  }
  0x3b   :  { %186 = vperm.xlu1 %440, %v45_v23   ;;  %181 = vperm.xlu0 %439, %v44_v24  }
  0x42   :  { %206 = vperm.xlu2 %441, %v49_v25  }
  0x43   :  { %201 = vperm.xlu1 %440, %v48_v26   ;;  %196 = vperm.xlu0 %439, %v47_v27  }
  0x4a   :  { %221 = vperm.xlu2 %441, %v52_v28  }
  0x4b   :  { %216 = vperm.xlu1 %440, %v51_v29   ;;  %211 = vperm.xlu0 %439, %v50_v30  }
  0x52   :  { %284 = vperm.xlu2 %441, %v266_v31  }
  0x53   :  { %231 = vperm.xlu1 %440, %v54_v32   ;;  %226 = vperm.xlu0 %439, %v53_v33  }
  0x5a   :  { %299 = vperm.xlu2 %441, %v269_v34  }
  0x5b   :  { %294 = vperm.xlu1 %440, %v268_v35   ;;  %289 = vperm.xlu0 %439, %v267_v36  }
  0x5c   :  { %v609_v37 = vpop.permute.xlu2 %77 }
  0x5d   :  { %v142_v32 = vmul.f32 %v678_v16, %v609_v37 }
  0x62   :  { %314 = vperm.xlu2 %441, %v272_v38  }
  0x63   :  { %309 = vperm.xlu1 %440, %v271_v39   ;;  %304 = vperm.xlu0 %439, %v270_v40  }
  0x64   :  { %v620_v41 = vpop.permute.xlu2 %82 }
  0x65   :  { %v143_v35 = vmul.f32 %v678_v16, %v620_v41 }
  0x6a   :  { %329 = vperm.xlu2 %441, %v275_v42  }
  0x6b   :  { %324 = vperm.xlu1 %440, %v274_v43   ;;  %319 = vperm.xlu0 %439, %v273_v44  }
  0x6c   :  { %v631_v45 = vpop.permute.xlu2 %97 }
  0x72   :  { %344 = vperm.xlu2 %441, %v278_v46  }
  0x73   :  { %339 = vperm.xlu1 %440, %v277_v47   ;;  %334 = vperm.xlu0 %439, %v276_v48  }
  0x74   :  { %v642_v49 = vpop.permute.xlu2 %112 }
  0x75   :  { %v68_v50 = vpop.permute.xlu1 %67  ;;  %v58_v51 = vpop.permute.xlu0 %57 }
  0x76   :  { %v138_v17 = vmul.f32 %v678_v16, %v58_v51  ;;  %v140_v21 = vmul.f32 %v678_v16, %v68_v50 }
  0x7a   :  { %359 = vperm.xlu2 %441, %v281_v52  }
  0x7b   :  { %354 = vperm.xlu1 %440, %v280_v53   ;;  %349 = vperm.xlu0 %439, %v279_v54  }
  0x7c   :  { %v653_v57 = vpop.permute.xlu2 %127 }
  0x7d   :  { %v73_v55 = vpop.permute.xlu1 %72  ;;  %v63_v56 = vpop.permute.xlu0 %62 }
  0x7e   :  { %v139_v22 = vmul.f32 %v678_v16, %v63_v56  ;;  %v141_v24 = vmul.f32 %v678_v16, %v73_v55  ;;  %v146_v55 = vmul.f32 %v678_v16, %v631_v45 }
  0x84   :  { %v162_v60 = vpop.permute.xlu2 %161 }
  0x85   :  { %v655_v58 = vpop.permute.xlu1 %92  ;;  %v88_v59 = vpop.permute.xlu0 %87  ;;  %v235_v25 = vadd.f32 %v162_v60, %v139_v22 }
  0x86   :  { %v144_v42 = vmul.f32 %v678_v16, %v88_v59 }
  0x87   :  { %v251_v29 = vmax.f32 %v235_v25, 0.0 }
  0x8c   :  { %v177_v63 = vpop.permute.xlu2 %176 }
  0x8d   :  { %v657_v61 = vpop.permute.xlu1 %107  ;;  %v659_v62 = vpop.permute.xlu0 %102  ;;  %v238_v43 = vadd.f32 %v177_v63, %v142_v32  ;;  %v145_v63 = vmul.f32 %v678_v16, %v655_v58 }
  0x8f   :  { %v254_v53 = vmax.f32 %v238_v43, 0.0 }
  0x94   :  { %v192_v2 = vpop.permute.xlu2 %191 }
  0x95   :  { %v661_v0 = vpop.permute.xlu1 %122  ;;  %v663_v1 = vpop.permute.xlu0 %117 }
  0x9c   :  { %v667_v7 = vpop.permute.xlu2 %206 }
  0x9d   :  { %v157_v3 = vpop.permute.xlu1 %156  ;;  %v665_v4 = vpop.permute.xlu0 %132 }
  0x9e   :  { %v234_v23 = vadd.f32 %v157_v3, %v138_v17 }
  0xa0   :  { %v250_v27 = vmax.f32 %v234_v23, 0.0 }
  0xa4   :  { %v669_v10 = vpop.permute.xlu2 %221 }
  0xa5   :  { %v172_v5 = vpop.permute.xlu1 %171  ;;  %v167_v6 = vpop.permute.xlu0 %166 }
  0xa6   :  { %v236_v26 = vadd.f32 %v167_v6, %v140_v21  ;;  %v237_v28 = vadd.f32 %v172_v5, %v141_v24 }
  0xa8   :  { %v252_v30 = vmax.f32 %v236_v26, 0.0  ;;  %v253_v36 = vmax.f32 %v237_v28, 0.0 }
  0xac   :  { %v285_v13 = vpop.permute.xlu2 %284 }
  0xad   :  { %v187_v8 = vpop.permute.xlu1 %186  ;;  %v182_v9 = vpop.permute.xlu0 %181  ;;  %v362_v31 = vmul.f32 %v285_v13, %v250_v27  ;;  %v149_v27 = vmul.f32 %v678_v16, %v642_v49 }
  0xae   :  { %v239_v46 = vadd.f32 %v182_v9, %v143_v35  ;;  %v240_v50 = vadd.f32 %v187_v8, %v144_v42  ;;  %v147_v8 = vmul.f32 %v678_v16, %v659_v62  ;;  %v241_v9 = vadd.f32 %v192_v2, %v145_v63 }
  0xaf   :  { %v379_v44 = vsel %vm378_vm0, %v362_v31, 0.0 }
  0xb0   :  { %v255_v41 = vmax.f32 %v239_v46, 0.0  ;;  %v256_v3 = vmax.f32 %v240_v50, 0.0  ;;  %v257_v25 = vmax.f32 %v241_v9, 0.0  ;;  %v151_v46 = vmul.f32 %v678_v16, %v661_v0 }
  0xb2   :  { %v247_v50 = vadd.f32 %v669_v10, %v151_v46 }
  0xb4   :  { %v300_v18 = vpop.permute.xlu2 %299  ;;  %v263_v0 = vmax.f32 %v247_v50, 0.0 }
  0xb5   :  { %v202_v11 = vpop.permute.xlu1 %201  ;;  %v197_v12 = vpop.permute.xlu0 %196  ;;  %v365_v47 = vmul.f32 %v300_v18, %v253_v36 }
  0xb6   :  { %v242_v13 = vadd.f32 %v197_v12, %v146_v55  ;;  %v243_v45 = vadd.f32 %v202_v11, %v147_v8  ;;  %v148_v12 = vmul.f32 %v678_v16, %v657_v61  ;;  %v150_v11 = vmul.f32 %v678_v16, %v663_v1 }
  0xb7   :  { %v384_v54 = vsel %vm378_vm0, %v365_v47, 0.0  ;;  %v152_v1 = vmul.f32 %v678_v16, %v653_v57 }
  0xb8   :  { %v258_v26 = vmax.f32 %v242_v13, 0.0  ;;  %v244_v32 = vadd.f32 %v667_v7, %v148_v12 }
  0xbc   :  { %v315_v38 = vpop.permute.xlu2 %314 }
  0xbd   :  { %v671_v14 = vpop.permute.xlu1 %216  ;;  %v673_v15 = vpop.permute.xlu0 %211  ;;  %v368_v17 = vmul.f32 %v315_v38, %v256_v3 }
  0xbe   :  { %v246_v36 = vadd.f32 %v671_v14, %v150_v11 }
  0xbf   :  { %v390_v58 = vsel %vm378_vm0, %v368_v17, 0.0 }
  0xc0   :  { %v262_v47 = vmax.f32 %v246_v36, 0.0 }
  0xc4   :  { %v330_v18 = vpop.permute.xlu2 %329 }
  0xc5   :  { %v681_v19 = vpop.permute.xlu1 %231  ;;  %v683_v20 = vpop.permute.xlu0 %226 }
  0xcc   :  { %v345_v38 = vpop.permute.xlu2 %344 }
  0xcd   :  { %v295_v33 = vpop.permute.xlu1 %294  ;;  %v290_v34 = vpop.permute.xlu0 %289 }
  0xce   :  { %v364_v39 = vmul.f32 %v295_v33, %v252_v30  ;;  %v363_v40 = vmul.f32 %v290_v34, %v251_v29  ;;  %v259_v29 = vmax.f32 %v243_v45, 0.0  ;;  %v245_v33 = vadd.f32 %v673_v15, %v149_v27 }
  0xd0   :  { %v380_v48 = vsel %vm378_vm0, %v363_v40, 0.0  ;;  %v382_v51 = vsel %vm378_vm0, %v364_v39, 0.0  ;;  %v371_v34 = vmul.f32 %v330_v18, %v259_v29  ;;  %v260_v40 = vmax.f32 %v244_v32, 0.0 }
  0xd1   :  { %v381_v37 = vadd.f32 %v380_v48, %v379_v44  ;;  %v261_v42 = vmax.f32 %v245_v33, 0.0 }
  0xd2   :  { %v396_v43 = vsel %vm378_vm0, %v371_v34, 0.0 }
  0xd3   :  { %v383_v52 = vadd.f32 %v382_v51, %v381_v37  ;;  %v153_v37 = vmul.f32 %v678_v16, %v665_v4  ;;  %v248_v51 = vadd.f32 %v683_v20, %v152_v1 }
  0xd5   :  { %v310_v56 = vpop.permute.xlu1 %309  ;;  %v305_v59 = vpop.permute.xlu0 %304  ;;  %v385_v60 = vadd.f32 %v384_v54, %v383_v52  ;;  %v374_v52 = vmul.f32 %v345_v38, %v262_v47 }
  0xd6   :  { %v367_v5 = vmul.f32 %v310_v56, %v255_v41  ;;  %v366_v6 = vmul.f32 %v305_v59, %v254_v53  ;;  %v249_v41 = vadd.f32 %v681_v19, %v153_v37  ;;  %v264_v56 = vmax.f32 %v248_v51, 0.0 }
  0xd7   :  { %v402_v59 = vsel %vm378_vm0, %v374_v52, 0.0 }
  0xd8   :  { %v386_v21 = vsel %vm378_vm0, %v366_v6, 0.0  ;;  %v388_v23 = vsel %vm378_vm0, %v367_v5, 0.0  ;;  %v265_v10 = vmax.f32 %v249_v41, 0.0 }
  0xd9   :  { %v387_v22 = vadd.f32 %v386_v21, %v385_v60  ;;  %v360_v60 = vpop.permute.xlu2 %359 }
  0xda   :  { %v377_v5 = vmul.f32 %v360_v60, %v265_v10 }
  0xdb   :  { %v389_v24 = vadd.f32 %v388_v23, %v387_v22 }
  0xdc   :  { %v408_v13 = vsel %vm378_vm0, %v377_v5, 0.0 }
  0xdd   :  { %v325_v28 = vpop.permute.xlu1 %324  ;;  %v320_v62 = vpop.permute.xlu0 %319  ;;  %v391_v2 = vadd.f32 %v390_v58, %v389_v24  ;;  %v417_v24 = vstv %s743_s4 }
  0xde   :  { %v370_v30 = vmul.f32 %v325_v28, %v258_v26  ;;  %v369_v31 = vmul.f32 %v320_v62, %v257_v25 }
  0xe0   :  { %v392_v35 = vsel %vm378_vm0, %v369_v31, 0.0  ;;  %v394_v39 = vsel %vm378_vm0, %v370_v30, 0.0 }
  0xe1   :  { %v393_v49 = vadd.f32 %v392_v35, %v391_v2 }
  0xe3   :  { %v395_v61 = vadd.f32 %v394_v39, %v393_v49 }
  0xe5   :  { %v340_v7 = vpop.permute.xlu1 %339  ;;  %v335_v44 = vpop.permute.xlu0 %334  ;;  %v397_v15 = vadd.f32 %v396_v43, %v395_v61 }
  0xe6   :  { %v373_v48 = vmul.f32 %v340_v7, %v261_v42  ;;  %v372_v14 = vmul.f32 %v335_v44, %v260_v40 }
  0xe8   :  { %v398_v53 = vsel %vm378_vm0, %v372_v14, 0.0  ;;  %v400_v54 = vsel %vm378_vm0, %v373_v48, 0.0 }
  0xe9   :  { %v399_v57 = vadd.f32 %v398_v53, %v397_v15 }
  0xeb   :  { %v401_v55 = vadd.f32 %v400_v54, %v399_v57 }
  0xed   :  { %v355_v63 = vpop.permute.xlu1 %354  ;;  %v350_v4 = vpop.permute.xlu0 %349  ;;  %v403_v16 = vadd.f32 %v402_v59, %v401_v55 }
  0xee   :  { %v376_v3 = vmul.f32 %v355_v63, %v264_v56  ;;  %v375_v20 = vmul.f32 %v350_v4, %v263_v0 }
  0xf0   :  { %v404_v6 = vsel %vm378_vm0, %v375_v20, 0.0  ;;  %v406_v19 = vsel %vm378_vm0, %v376_v3, 0.0 }
  0xf1   :  { %v405_v8 = vadd.f32 %v404_v6, %v403_v16 }
  0xf3   :  { %v407_v9 = vadd.f32 %v406_v19, %v405_v8 }
  0xf5   :  { %v409_v17 = vadd.f32 %v408_v13, %v407_v9 }
  0xf7   :  { %v410_v18 = vrot.slane %v409_v17, 4 }
  0xf9   :  { %v411_v21 = vadd.f32 %v410_v18, %v409_v17 }
  0xfb   :  { %v412_v22 = vrot.slane %v411_v21, 2 }
  0xfd   :  { %v413_v45 = vadd.f32 %v412_v22, %v411_v21 }
  0xff   :  { %v414_v23 = vrot.slane %v413_v45, 1 }
 0x101   :  { %v415_v25 = vadd.f32 %v414_v23, %v413_v45 }
 0x103   :  { %v418_v26 = vadd.f32 %v417_v24, %v415_v25 }
 0x105   :  { %420 = vst.msk [vmem:[#allocation3] sm:$0x1] %vm419_vm1, %v418_v26 }
 0x106   :  { %431 = dma.vmem_to_hbm [thread:$0]  %s427_s2, 16, %s429_s15, [#allocation4]  }
 0x107   :  { %467 = dma.done.wait [#allocation4], 16  }
 0x108   :  { %468 = vsyncadd [#allocation4], 4294967280 }
 0x109   :  { %436 = vsyncpa [#allocation4], 1 }

</bundles_post_ra>
